<compile_context>
chip_gen: v7x
topology: tpu7x:2x2x1
jax: 0.10.0
libtpu: 0.0.40
codegen_flags: <defaults>
</compile_context>

<pallas_src>
import jax
import jax.numpy as jnp
from jax.experimental import pallas as pl
from jax.experimental.pallas import tpu as pltpu


def _splithead_kernel(patch_ref, w1t_ref, shift_ref, w2t_ref, b2_ref, out_ref):
    # patch_ref : [9*C,  Mb]            im2col patch, channel-major, Mb lane-dense
    # w1t_ref   : [nH*C, 9*C]           3x3 conv weights (BN scale folded), transposed
    # shift_ref : [nH*C, 1]             folded BN shift (beta - mean*scale)
    # w2t_ref   : [nH*F, nH*C]          block-diagonal 1x1 conv weights, transposed
    # b2_ref    : [nH*F, 1]             1x1 conv bias (zero-padded per head to F_max)
    # out_ref   : [nH*F, Mb]            channel-major output
    acc = jnp.dot(w1t_ref[...], patch_ref[...],
                  preferred_element_type=jnp.float32)          # [nH*C, Mb]
    y = jnp.maximum(acc + shift_ref[...], 0.0)                 # shift + ReLU
    o = jnp.dot(w2t_ref[...], y,
                preferred_element_type=jnp.float32) + b2_ref[...]  # [nH*F, Mb]
    out_ref[...] = o.astype(out_ref.dtype)


def split_head_forward(x_nchw, params):
    """SplitHead.forward: dict of per-key heads applied to the same input.

    All heads run in a single pallas_call / single MXU pass: heads are fused into
    the matmul output dimension, and the im2col patch is built once in the wrapper.
    """
    names = list(params.keys())
    n_heads = len(names)
    N, C, H, W = x_nchw.shape
    M = N * H * W
    KC = 9 * C
    f_dims = [int(params[k]["w2"].shape[-1]) for k in names]
    F_max = max(f_dims)
    nHC = n_heads * C
    nHF = n_heads * F_max

    # ---- im2col patch, built ONCE, channel-major so M is the minor (lane) dim ----
    # patch_T[(tap*C + c), n*H*W + h*W + w] = x_pad[n, c, h+dy, w+dx],  tap = dy*3+dx
    x_cnhw = jnp.transpose(x_nchw.astype(jnp.float32), (1, 0, 2, 3))  # [C, N, H, W]
    xpad = jnp.pad(x_cnhw, ((0, 0), (0, 0), (1, 1), (1, 1)))          # [C, N, H+2, W+2]
    taps = [xpad[:, :, dy:dy + H, dx:dx + W]
            for dy in range(3) for dx in range(3)]                    # 9 x [C, N, H, W]
    patch_T = jnp.concatenate(taps, axis=0).reshape(KC, M)            # [9*C, M]

    # ---- per-head parameter prep: fold BN, stack heads, transpose (weights-left) ----
    w1t_rows, shift_rows, b2_rows = [], [], []
    w2t = jnp.zeros((nHF, nHC), jnp.float32)
    for i, (k, F) in enumerate(zip(names, f_dims)):
        p = params[k]
        # fold BN scale into the 3x3 conv weights (exact); HWIO -> [9*C, C] -> [C, 9*C]
        w1f = (p["w1"].astype(jnp.float32)
               * p["bn_scale"].astype(jnp.float32)[None, None, None, :])
        w1t_rows.append(w1f.reshape(KC, C).T)                         # [C, 9*C]
        shift_rows.append(p["bn_shift"].astype(jnp.float32))          # [C]
        # block-diagonal transposed 1x1 weights: block (i,i) = w2_i.T  (F x C)
        w2t = w2t.at[i * F_max:i * F_max + F, i * C:(i + 1) * C].set(
            p["w2"].astype(jnp.float32).T)
        b2_rows.append(jnp.pad(p["b2"].astype(jnp.float32), (0, F_max - F)))
    w1t = jnp.concatenate(w1t_rows, axis=0)                           # [nH*C, 9*C]
    shift = jnp.concatenate(shift_rows).reshape(nHC, 1)               # [nH*C, 1]
    b2 = jnp.concatenate(b2_rows).reshape(nHF, 1)                     # [nH*F, 1]

    # ---- grid: 2-way parallel split over M (feeds both v7x TCs); else single step ----
    n_m_blocks = 2 if (M % 2 == 0 and (M // 2) % 128 == 0) else 1
    MB = M // n_m_blocks

    out = pl.pallas_call(
        _splithead_kernel,
        out_shape=jax.ShapeDtypeStruct((nHF, M), jnp.float32),
        grid=(n_m_blocks,),
        in_specs=[
            pl.BlockSpec((KC, MB), lambda m: (0, m)),     # patch: split along M
            pl.BlockSpec((nHC, KC), lambda m: (0, 0)),    # weights shared across steps
            pl.BlockSpec((nHC, 1), lambda m: (0, 0)),
            pl.BlockSpec((nHF, nHC), lambda m: (0, 0)),
            pl.BlockSpec((nHF, 1), lambda m: (0, 0)),
        ],
        out_specs=pl.BlockSpec((nHF, MB), lambda m: (0, m)),
        compiler_params=pltpu.CompilerParams(
            dimension_semantics=("parallel",)),
    )(patch_T, w1t, shift, w2t, b2)

    # ---- unpack: output is already channel-major -> slice + leading-axis swap ----
    out = out.reshape(n_heads, F_max, N, H, W)
    result = {}
    for i, (k, F) in enumerate(zip(names, f_dims)):
        result[k] = jnp.transpose(out[i, :F], (1, 0, 2, 3))           # -> [N, F, H, W]
    return result


def _ref_head(x_nhwc, w1, scale, shift, w2, b2):
    y = jax.lax.conv_general_dilated(
        x_nhwc, w1, window_strides=(1, 1), padding="SAME",
        dimension_numbers=("NHWC", "HWIO", "NHWC"))
    y = y * scale[None, None, None, :] + shift[None, None, None, :]
    y = jnp.maximum(y, 0.0)
    return jnp.einsum("nhwc,cf->nhwf", y, w2) + b2[None, None, None, :]


def make_params(key, in_dim, out_dims):
    """Deterministic synthetic parameters. BN is folded into scale/shift."""
    params = {}
    eps = 1e-5
    for i, (name, fn) in enumerate(sorted(out_dims.items())):
        k = jax.random.fold_in(key, i)
        k1, k2, k3, k4, k5, k6, k7 = jax.random.split(k, 7)
        w1 = jax.random.normal(k1, (3, 3, in_dim, in_dim), jnp.float32) * 0.1
        gamma = 1.0 + 0.1 * jax.random.normal(k2, (in_dim,), jnp.float32)
        beta = 0.1 * jax.random.normal(k3, (in_dim,), jnp.float32)
        mean = 0.1 * jax.random.normal(k4, (in_dim,), jnp.float32)
        var = jnp.abs(jax.random.normal(k5, (in_dim,), jnp.float32)) + 0.5
        scale = gamma / jnp.sqrt(var + eps)
        shift = beta - mean * scale
        w2 = jax.random.normal(k6, (in_dim, fn), jnp.float32) * 0.1
        b2 = 0.1 * jax.random.normal(k7, (fn,), jnp.float32)
        params[name] = dict(w1=w1, bn_scale=scale, bn_shift=shift, w2=w2, b2=b2)
    return params


if __name__ == "__main__":
    N, C, H, W = 2, 16, 16, 16            # in_dim = 16
    out_dims = {"heatmap": 8, "offset": 16}

    key = jax.random.PRNGKey(0)
    kx, kp = jax.random.split(key)
    x_nchw = jax.random.normal(kx, (N, C, H, W), jnp.float32)
    params = make_params(kp, C, out_dims)

    outs = split_head_forward(x_nchw, params)
    outs = jax.block_until_ready(outs)

    # correctness check against pure-JAX reference
    x_nhwc = jnp.transpose(x_nchw, (0, 2, 3, 1))
    for name, p in params.items():
        ref = _ref_head(x_nhwc, p["w1"], p["bn_scale"], p["bn_shift"],
                        p["w2"], p["b2"])
        ref_nchw = jnp.transpose(ref, (0, 3, 1, 2))
        assert outs[name].shape == (N, out_dims[name], H, W)
        assert jnp.allclose(outs[name], ref_nchw, rtol=1e-4, atol=1e-4), name

    print("KERNEL_OK")
</pallas_src>

<mosaic_0001>
module attributes {stable_mosaic.version = 11 : i64} {
  func.func @_splithead_kernel(%arg0: i32, %arg1: memref<144x256xf32, #tpu.memory_space<vmem>>, %arg2: memref<32x144xf32, #tpu.memory_space<vmem>>, %arg3: memref<32x1xf32, #tpu.memory_space<vmem>>, %arg4: memref<32x32xf32, #tpu.memory_space<vmem>>, %arg5: memref<32x1xf32, #tpu.memory_space<vmem>>, %arg6: memref<32x256xf32, #tpu.memory_space<vmem>>) attributes {dimension_semantics = [#tpu.dimension_semantics<parallel>], iteration_bounds = array<i64: 2>, scalar_prefetch = 0 : i64, scratch_operands = 0 : i64, tpu.core_type = #tpu.core_type<tc>, window_params = [{transform_indices = @transform_0, window_bounds = array<i64: 144, 256>}, {pipeline_mode = #tpu.pipeline_mode<synchronous>, transform_indices = @transform_1, window_bounds = array<i64: 32, 144>}, {pipeline_mode = #tpu.pipeline_mode<synchronous>, transform_indices = @transform_2, window_bounds = array<i64: 32, 1>}, {pipeline_mode = #tpu.pipeline_mode<synchronous>, transform_indices = @transform_3, window_bounds = array<i64: 32, 32>}, {pipeline_mode = #tpu.pipeline_mode<synchronous>, transform_indices = @transform_4, window_bounds = array<i64: 32, 1>}, {transform_indices = @transform_5, window_bounds = array<i64: 32, 256>}]} {
    %c0 = arith.constant 0 : index
    %c0_0 = arith.constant 0 : index
    %0 = vector.load %arg2[%c0, %c0_0] : memref<32x144xf32, #tpu.memory_space<vmem>>, vector<32x144xf32>
    %c0_1 = arith.constant 0 : index
    %c0_2 = arith.constant 0 : index
    %1 = vector.load %arg1[%c0_1, %c0_2] : memref<144x256xf32, #tpu.memory_space<vmem>>, vector<144x256xf32>
    %cst = arith.constant dense<0.000000e+00> : vector<32x256xf32>
    %2 = tpu.matmul %0, %1, %cst {dimension_numbers = #tpu.dot_dimension_numbers<[1], [0], [0], [1], [0, 0, 1, 1], [], []>} : vector<32x144xf32>, vector<144x256xf32>, vector<32x256xf32> -> vector<32x256xf32>
    %c0_3 = arith.constant 0 : index
    %c0_4 = arith.constant 0 : index
    %3 = vector.load %arg3[%c0_3, %c0_4] : memref<32x1xf32, #tpu.memory_space<vmem>>, vector<32x1xf32>
    %4 = vector.broadcast %3 : vector<32x1xf32> to vector<32x256xf32>
    %5 = arith.addf %2, %4 : vector<32x256xf32>
    %cst_5 = arith.constant 0.000000e+00 : f32
    %6 = vector.broadcast %cst_5 : f32 to vector<32x256xf32>
    %7 = arith.maximumf %5, %6 : vector<32x256xf32>
    %c0_6 = arith.constant 0 : index
    %c0_7 = arith.constant 0 : index
    %8 = vector.load %arg4[%c0_6, %c0_7] : memref<32x32xf32, #tpu.memory_space<vmem>>, vector<32x32xf32>
    %cst_8 = arith.constant dense<0.000000e+00> : vector<32x256xf32>
    %9 = tpu.matmul %8, %7, %cst_8 {dimension_numbers = #tpu.dot_dimension_numbers<[1], [0], [0], [1], [0, 0, 1, 1], [], []>} : vector<32x32xf32>, vector<32x256xf32>, vector<32x256xf32> -> vector<32x256xf32>
    %c0_9 = arith.constant 0 : index
    %c0_10 = arith.constant 0 : index
    %10 = vector.load %arg5[%c0_9, %c0_10] : memref<32x1xf32, #tpu.memory_space<vmem>>, vector<32x1xf32>
    %11 = vector.broadcast %10 : vector<32x1xf32> to vector<32x256xf32>
    %12 = arith.addf %9, %11 : vector<32x256xf32>
    %c0_11 = arith.constant 0 : index
    %c0_12 = arith.constant 0 : index
    %13 = vector.load %arg6[%c0_11, %c0_12] : memref<32x256xf32, #tpu.memory_space<vmem>>, vector<32x256xf32>
    tpu.vector_store %arg6[%c0_11, %c0_12], %12 {strides = array<i32>} : memref<32x256xf32, #tpu.memory_space<vmem>>, vector<32x256xf32>,
    return
  }
  func.func @transform_0(%arg0: i32) -> (i32, i32) {
    %c0_i32 = arith.constant 0 : i32
    %c0_i32_0 = arith.constant 0 : i32
    return %c0_i32, %arg0 : i32, i32
  }
  func.func @transform_1(%arg0: i32) -> (i32, i32) {
    %c0_i32 = arith.constant 0 : i32
    %c0_i32_0 = arith.constant 0 : i32
    %c0_i32_1 = arith.constant 0 : i32
    return %c0_i32, %c0_i32_0 : i32, i32
  }
  func.func @transform_2(%arg0: i32) -> (i32, i32) {
    %c0_i32 = arith.constant 0 : i32
    %c0_i32_0 = arith.constant 0 : i32
    %c0_i32_1 = arith.constant 0 : i32
    return %c0_i32, %c0_i32_0 : i32, i32
  }
  func.func @transform_3(%arg0: i32) -> (i32, i32) {
    %c0_i32 = arith.constant 0 : i32
    %c0_i32_0 = arith.constant 0 : i32
    %c0_i32_1 = arith.constant 0 : i32
    return %c0_i32, %c0_i32_0 : i32, i32
  }
  func.func @transform_4(%arg0: i32) -> (i32, i32) {
    %c0_i32 = arith.constant 0 : i32
    %c0_i32_0 = arith.constant 0 : i32
    %c0_i32_1 = arith.constant 0 : i32
    return %c0_i32, %c0_i32_0 : i32, i32
  }
  func.func @transform_5(%arg0: i32) -> (i32, i32) {
    %c0_i32 = arith.constant 0 : i32
    %c0_i32_0 = arith.constant 0 : i32
    return %c0_i32, %arg0 : i32, i32
  }
}

</mosaic_0001>

<bundles_post_ra>
// kernel: tpu_custom_call.1
= control target key start
LH: loop header
LB: loop body
LE: loop exit
PB: predicated region body
PF: predicated region fallthrough
CT: control target
= control target key end

     0   :  { %10 = vsyncpa [#allocation3], 0  ;;  %s1276_s0 = inlined_call_operand.hbm [shape: f32[144,512], index: 0, kind: input, shape index: {}]   ;;  %s1277_s1 = inlined_call_operand.vmem [shape: f32[32,144], index: 1, kind: input, shape index: {}]   ;;  %s1278_s2 = inlined_call_operand.vmem [shape: f32[32,1], index: 2, kind: input, shape index: {}]   ;;  %s1279_s3 = inlined_call_operand.hbm [shape: f32[32,32], index: 3, kind: input, shape index: {}]   ;;  %s1280_s4 = inlined_call_operand.vmem [shape: f32[32,1], index: 4, kind: input, shape index: {}]   ;;  %s1281_s5 = inlined_call_operand.hbm [shape: f32[32,512], index: 5, kind: output, shape index: {}]  }
   0x1   :  { %12 = vsyncpa [#allocation3 + $0x1], 0 }
   0x2   :  { %13 = vsyncpa [#allocation6], 0 }
   0x3   :  { %14 = vsyncpa [#allocation4], 0 }
   0x4   :  { %16 = vsyncpa [#allocation4 + $0x1], 0  ;;  %s985_s18 = smov 0   ;;  %s987_s19 = smov 0  }
   0x5   :  { %s989_s20 = smov 0   ;;  %s991_s21 = smov 0  }
   0x6 LB: > { %s1006_s22 = sadd.s32 4294967295, %s940_s21   ;;  %s673_s23 = sadd.s32 4294967294, %s940_s21   ;;  %s940_s21 = sphi %s991_s21, %s1305_s21   ;;  %s936_s20 = sphi %s989_s20, %s1304_s20   ;;  %s932_s19 = sphi %s987_s19, %s1303_s19   ;;  %s928_s18 = sphi %s985_s18, %s1302_s18  }
   0x7   : > { %s1010_s24 = sadd.s32 1, %s940_s21   ;;  %s29_s25 = sadd.s32 1, %s936_s20 }
   0x8   : > { %s26_s26 = ssub.s32 %s940_s21, %s1010_s24  ;;  %p36_p0 = scmp.ne.s32.totalorder %s936_s20, %s932_s19 }
   0x9   : > { %p27_p1 = scmp.eq.s32.totalorder %s26_s26, 0  ;;  %p37_p2 = scmp.eq.s32.totalorder %s940_s21, 0 }
   0xa   : > { %p42_p3 = scmp.ne.s32.totalorder %s932_s19, %s928_s18  ;;  %p1282_p4 = scmp.eq.s32.totalorder %s1006_s22, 0 }
   0xb   : > { %s1022_s27 = scalar_select %p27_p1, %s936_s20, %s29_s25  }
   0xc   : > { %p1024_p5 = por %p37_p2, %p36_p0  ;;  %p1030_p6 = por %p1282_p4, %p42_p3 }
   0xd   : > { %p150_p7 = scmp.eq.s32.totalorder %s1006_s22, 1  ;;  %p156_p8 = scmp.eq.s32.totalorder %s673_s23, 1 }
   0xe   : > { %s1286_s28 = scalar_select %p1024_p5, 1, 0 }
   0xf   : > { %s1287_s29 = scalar_select %p1030_p6, 1, 0 }
  0x10   : > { %p674_p9 = scmp.ge.s32.totalorder %s940_s21, 1  ;;  %p163_p10 = scmp.lt.s32.totalorder %s940_s21, 3 }
  0x11   : > { %p1037_p11 = por %p150_p7, %p36_p0  ;;  %p1041_p12 = por %p156_p8, %p42_p3 }
  0x12   : > { %p1045_p13 = pnand %p674_p9, %p163_p10  ;;  %s942_s8 = smov [#allocation5]  }
  0x13   : > { %s1288_s30 = scalar_select %p1037_p11, 1, 0 }
  0x14   : > { %s1289_s6 = scalar_select %p1041_p12, 1, 0 }
  0x15   : > { %s1290_s7 = scalar_select %p1045_p13, 1, 0 }
  0x16   : > { %p751_p1 = pneg %p1045_p13  ;;  %s181_s9 = sshll.u32 %s942_s8, 4  ;;  %s182_s9 = int_to_ptr.vmem [resolvable:$true] %s181_s9 }
  0x17   : > { %s198_s11 = sand.u32 1, %s936_s20   ;;  %s812_s14 = scalar_lea.hbm %s1279_s3, 512 }
  0x18   : > { %p1053_p2 = pnand %p751_p1, %p1282_p4  ;;  %p813_p7 = scmp.ne.s32.totalorder %s1279_s3, %s812_s14 }
  0x19   : > { %p819_p1 = scmp.lt.u32.totalorder %s812_s14, %s1279_s3 }
  0x1a   : > { %p814_p8 = pneg %p1053_p2 }
  0x1c   : > { %p815_p9 = pnand %p814_p8, %p813_p7 }
  0x1e   : > { %p816_p10 = pneg %p815_p9 }
  0x20   : > { %p821_p4 = pnand %p819_p1, %p816_p10 }
  0x22   : > { %824 = shalt.err (!%p821_p4)
}
  0x23   : > { %s825_s25 = scalar_lea.vmem %s182_s9, 512  ;;  %p833_p11 = scmp.lt.s32.totalorder %s182_s9, %s182_s9 }
  0x24   : > { %p826_p0 = scmp.ne.s32.totalorder %s182_s9, %s825_s25  ;;  %p834_p6 = scmp.lt.s32.totalorder %s825_s25, %s825_s25 }
  0x26   : > { %p828_p3 = pnand %p826_p0, %p814_p8  ;;  %p835_p13 = por %p834_p6, %p833_p11 }
  0x28   : > { %p829_p12 = pneg %p828_p3 }
  0x2a   : > { %p836_p5 = pnand %p835_p13, %p829_p12 }
  0x2c   : > { %839 = shalt.err (!%p836_p5)
}
  0x2d   : > { %s943_s26 = smov 128   ;;  %s944_s8 = smov 8  }
  0x2e   : > { %754 = dma.hbm_to_vmem [thread:$0]  (!%p1053_p2), %s1279_s3, 512, %s182_s9, [#allocation6], %s943_s26, %s943_s26, %s944_s8  }
  0x2f   : > { %p1292_p4 = scmp.ne.s32.totalorder %s1286_s28, 0  ;;  %p1293_p7 = scmp.lt.s32.totalorder %s940_s21, 2 }
  0x30   : > { %s741_s15 = smul.u32 288, %s198_s11  ;;  %s695_s16 = sshll.u32 %s940_s21, 8 }
  0x31   : > { %p1080_p0 = pnand %p1293_p7, %p1292_p4  ;;  %s1088_s25 = scalar_lea.hbm %s1276_s0, %s695_s16 }
  0x32   : > { %s202_s9 = scalar_lea.vmem [#allocation2], %s741_s15  ;;  %s1092_s10 = scalar_lea.sflag [#allocation3], %s198_s11 }
  0x33   : > { %s209_s28 = sshll.u32 %s202_s9, 4  ;;  %s840_s26 = scalar_lea.hbm %s1088_s25, 4608  ;;  %s1090_s28 = int_to_ptr.vmem [resolvable:$true] %s209_s28 }
  0x34   : > { %p841_p5 = scmp.ne.s32.totalorder %s1088_s25, %s840_s26  ;;  %p842_p6 = pneg %p1080_p0 }
  0x35   : > { %s845_s13 = scalar_lea.hbm %s1276_s0, 9216  ;;  %p846_p13 = scmp.lt.u32.totalorder %s1088_s25, %s1276_s0 }
  0x36   : > { %p843_p11 = pnand %p842_p6, %p841_p5  ;;  %p847_p2 = scmp.lt.u32.totalorder %s845_s13, %s840_s26 }
  0x37   : > { %p849_p8 = scmp.lt.u32.totalorder %s840_s26, %s1088_s25 }
  0x38   : > { %p844_p12 = pneg %p843_p11  ;;  %p848_p3 = por %p847_p2, %p846_p13 }
  0x3a   : > { %p850_p9 = por %p849_p8, %p848_p3 }
  0x3c   : > { %p851_p10 = pnand %p850_p9, %p844_p12 }
  0x3e   : > { %854 = shalt.err (!%p851_p10)
}
  0x3f   : > { %s855_s11 = scalar_lea.vmem %s1090_s28, 4608  ;;  %s945_s15 = smov [#allocation2]  }
  0x40   : > { %p856_p1 = scmp.ne.s32.totalorder %s1090_s28, %s855_s11  ;;  %s860_s23 = sshll.u32 %s945_s15, 4  ;;  %s861_s23 = int_to_ptr.vmem [resolvable:$false] %s860_s23 }
  0x41   : > { %s862_s9 = scalar_lea.vmem %s861_s23, 9216  ;;  %p863_p5 = scmp.lt.s32.totalorder %s1090_s28, %s861_s23 }
  0x42   : > { %p858_p4 = pnand %p856_p1, %p842_p6  ;;  %p864_p11 = scmp.lt.s32.totalorder %s862_s9, %s855_s11 }
  0x44   : > { %p859_p7 = pneg %p858_p4  ;;  %p865_p13 = por %p864_p11, %p863_p5 }
  0x46   : > { %p866_p2 = pnand %p865_p13, %p859_p7 }
  0x48   : > { %869 = shalt.err (!%p866_p2)
}
  0x49   : > { %s946_s26 = smov 512   ;;  %s947_s8 = smov 256  }
  0x4a   : > { %s948_s12 = smov 16   ;;  %p1295_p6 = scmp.ne.s32.totalorder %s1290_s7, 0 }
  0x4b   : > { %758 = dma.hbm_to_vmem [thread:$0]  (!%p1080_p0), %s1088_s25, 4608, %s1090_s28, %s1092_s10, %s946_s26, %s947_s8, %s948_s12  }
  0x4c   : > { %221 = sbr.rel (%p1295_p6) target bundleno = 604 (0x25c), region = 40  ;;  %s1123_s13 = sand.u32 (!%p1295_p6), 1, %s932_s19  }
  0x4d   : > { %s742_s16 = smul.u32 (!%p1295_p6), 288, %s1123_s13  ;;  %s224_s17 = scalar_lea.sflag (!%p1295_p6), [#allocation3], %s1123_s13 }
  0x4e   : > { %p1296_p12 = scmp.ne.s32.totalorder (!%p1295_p6), %s1287_s29, 0 }
  0x4f   : > { %s1127_s11 = scalar_lea.vmem (!%p1295_p6), [#allocation2], %s742_s16 }
  0x53   : > { %915 = dma.done.wait (%p1296_p12), %s224_s17, 4608  }
  0x54   : > { %917 = vsyncadd (%p1296_p12), %s224_s17, 4294962688  ;;  %p1297_p0 = scmp.eq.s32.totalorder %s1006_s22, 0 }
  0x56   : > { %919 = dma.done.wait (%p1297_p0), [#allocation6], 512   ;;  %p1298_p3 = pmov %p1297_p0 }
  0x57   : > { %v949_v0 = vmov 0   ;;  %v269_v1 = vld [vmem:[%s1127_s11 + $0x8] sm:$0xff]  ;;  %v271_v2 = vld [vmem:[%s1127_s11 + $0x18] sm:$0xff]  ;;  %v268_v3 = vld [vmem:[%s1127_s11] sm:$0xff]  ;;  %vm328_vm0 = vcmask 130048   ;;  %vm466_vm1 = vcmask 261120  }
  0x58   : > { %921 = vsyncadd (%p1298_p3), [#allocation6], 4294966784  ;;  %810 = vset.pattern.permute.xlu0 %v949_v0  ;;  %811 = vset.pattern.permute.xlu1 %v949_v0  ;;  %v697_v4 = vpack.c.bf16 %v271_v2, %v269_v1  ;;  %v270_v5 = vld [vmem:[%s1127_s11 + $0x10] sm:$0xff]  ;;  %v273_v6 = vld [vmem:[%s1127_s11 + $0x28] sm:$0xff]  ;;  %s681_s25 = sshll.u32 %s1123_s13, 6  ;;  %s696_s15 = sshll.u32 %s1006_s22, 8 }
  0x59   : > { %v275_v7 = vld [vmem:[%s1127_s11 + $0x38] sm:$0xff]  ;;  %v699_v8 = vpack.c.bf16 %v270_v5, %v268_v3  ;;  %v272_v10 = vld [vmem:[%s1127_s11 + $0x20] sm:$0xff]  ;;  %v274_v11 = vld [vmem:[%s1127_s11 + $0x30] sm:$0xff]  ;;  %s257_s28 = scalar_lea.vmem [#allocation7], %s681_s25  ;;  %s1232_s26 = scalar_lea.hbm %s1281_s5, %s696_s15 }
  0x5a   : > { %v701_v9 = vpack.c.bf16 %v275_v7, %v273_v6  ;;  %v277_v12 = vld [vmem:[%s1127_s11 + $0x48] sm:$0xff]  ;;  %698 = vmatprep.subr.bf16.mxu0 %v697_v4  ;;  %v279_v13 = vld [vmem:[%s1127_s11 + $0x58] sm:$0xff]  ;;  %v703_v14 = vpack.c.bf16 %v274_v11, %v272_v10  ;;  %v276_v16 = vld [vmem:[%s1127_s11 + $0x40] sm:$0xff]  ;;  %v950_v7 = vmov 0.0   ;;  %s590_s10 = sshll.u32 %s257_s28, 4  ;;  %s577_s22 = scalar_lea.sflag [#allocation4], %s1123_s13  ;;  %s1227_s10 = int_to_ptr.vmem [resolvable:$true] %s590_s10 }
  0x5b   : > { %700 = vmatpush1.bf16.msra.mxu0 %v699_v8  ;;  %v705_v15 = vpack.c.bf16 %v279_v13, %v277_v12  ;;  %v278_v17 = vld [vmem:[%s1127_s11 + $0x50] sm:$0xff]  ;;  %v281_v18 = vld [vmem:[%s1127_s11 + $0x68] sm:$0xff]  ;;  %v283_v19 = vld [vmem:[%s1127_s11 + $0x78] sm:$0xff]  ;;  %543 = vmatprep.mubr.f32.mxu1 %v950_v7  ;;  %p1299_p9 = scmp.ne.s32.totalorder %s1288_s30, 0  ;;  %s951_s8 = smov [#allocation7]  }
  0x5c   : > { %702 = vmatprep.subr.bf16.mxu0 %v701_v9  ;;  %v707_v20 = vpack.c.bf16 %v278_v17, %v276_v16  ;;  %v709_v21 = vpack.c.bf16 %v283_v19, %v281_v18  ;;  %v280_v22 = vld [vmem:[%s1127_s11 + $0x60] sm:$0xff]  ;;  %v282_v23 = vld [vmem:[%s1127_s11 + $0x70] sm:$0xff]  ;;  %v285_v24 = vld [vmem:[%s1127_s11 + $0x88] sm:$0xff]  ;;  %s874_s12 = sshll.u32 %s951_s8, 4  ;;  %s875_s12 = int_to_ptr.vmem [resolvable:$false] %s874_s12 }
  0x5d   : > { %v287_v25 = vld [vmem:[%s1127_s11 + $0x98] sm:$0xff]  ;;  %v711_v26 = vpack.c.bf16 %v282_v23, %v280_v22  ;;  %v261_v27 = vld [vmem:[%s1277_s1 + $0x8] sm:$0xff]  ;;  %v284_v29 = vld [vmem:[%s1127_s11 + $0x80] sm:$0xff]  ;;  %s876_s16 = scalar_lea.vmem %s875_s12, 2048  ;;  %p877_p4 = scmp.lt.s32.totalorder %s1227_s10, %s875_s12 }
  0x5e   : > { %v713_v28 = vpack.c.bf16 %v287_v25, %v285_v24  ;;  %v286_v30 = vld [vmem:[%s1127_s11 + $0x90] sm:$0xff]  ;;  %682 = vmatprep.mubr.msk.f32.mxu0 %vm328_vm0, %v261_v27  ;;  %v289_v31 = vld [vmem:[%s1127_s11 + $0xa8] sm:$0xff]  ;;  %v291_v32 = vld [vmem:[%s1127_s11 + $0xb8] sm:$0xff] }
  0x5f   : > { %704 = vmatpush1.bf16.msra.mxu0 %v703_v14  ;;  %v304_v33 = vld [vmem:[%s1278_s2] sm:$0xff]  ;;  %v306_v34 = vld [vmem:[%s1278_s2 + $0x10] sm:$0xff]  ;;  %v715_v35 = vpack.c.bf16 %v286_v30, %v284_v29  ;;  %v305_v36 = vld [vmem:[%s1278_s2 + $0x8] sm:$0xff]  ;;  %v717_v37 = vpack.c.bf16 %v291_v32, %v289_v31 }
  0x60   : > { %706 = vmatprep.subr.bf16.mxu0 %v705_v15  ;;  %310 = vperm.xlu0 %810, %v304_v33   ;;  %v288_v38 = vld [vmem:[%s1127_s11 + $0xa0] sm:$0xff]  ;;  %v290_v39 = vld [vmem:[%s1127_s11 + $0xb0] sm:$0xff]  ;;  %v307_v40 = vld [vmem:[%s1278_s2 + $0x18] sm:$0xff] }
  0x61   : > { %320 = vperm.xlu1 %811, %v306_v34   ;;  %v293_v41 = vld [vmem:[%s1127_s11 + $0xc8] sm:$0xff]  ;;  %v295_v42 = vld [vmem:[%s1127_s11 + $0xd8] sm:$0xff]  ;;  %v719_v43 = vpack.c.bf16 %v290_v39, %v288_v38  ;;  %v442_v44 = vld [vmem:[%s1280_s4] sm:$0xff] }
  0x62   : > { %v721_v45 = vpack.c.bf16 %v295_v42, %v293_v41  ;;  %v292_v46 = vld [vmem:[%s1127_s11 + $0xc0] sm:$0xff]  ;;  %v294_v47 = vld [vmem:[%s1127_s11 + $0xd0] sm:$0xff]  ;;  %v443_v48 = vld [vmem:[%s1280_s4 + $0x8] sm:$0xff] }
  0x63   : > { %708 = vmatpush1.bf16.msra.mxu0 %v707_v20  ;;  %v297_v49 = vld [vmem:[%s1127_s11 + $0xe8] sm:$0xff]  ;;  %v299_v50 = vld [vmem:[%s1127_s11 + $0xf8] sm:$0xff]  ;;  %v723_v51 = vpack.c.bf16 %v294_v47, %v292_v46  ;;  %v444_v52 = vld [vmem:[%s1280_s4 + $0x10] sm:$0xff] }
  0x64   : > { %710 = vmatprep.subr.bf16.mxu0 %v709_v21  ;;  %315 = vperm.xlu0 %810, %v305_v36   ;;  %v725_v53 = vpack.c.bf16 %v299_v50, %v297_v49  ;;  %v296_v54 = vld [vmem:[%s1127_s11 + $0xe0] sm:$0xff]  ;;  %v298_v55 = vld [vmem:[%s1127_s11 + $0xf0] sm:$0xff]  ;;  %v445_v56 = vld [vmem:[%s1280_s4 + $0x18] sm:$0xff] }
  0x65   : > { %325 = vperm.xlu1 %811, %v307_v40   ;;  %v301_v57 = vld [vmem:[%s1127_s11 + $0x108] sm:$0xff]  ;;  %v303_v58 = vld [vmem:[%s1127_s11 + $0x118] sm:$0xff]  ;;  %v727_v59 = vpack.c.bf16 %v298_v55, %v296_v54  ;;  %v300_v61 = vld [vmem:[%s1127_s11 + $0x100] sm:$0xff] }
  0x66   : > { %v729_v60 = vpack.c.bf16 %v303_v58, %v301_v57  ;;  %v302_v62 = vld [vmem:[%s1127_s11 + $0x110] sm:$0xff]  ;;  %v260_v0 = vld [vmem:[%s1277_s1] sm:$0xff]  ;;  %v263_v1 = vld [vmem:[%s1277_s1 + $0x18] sm:$0xff]  ;;  %s870_s11 = scalar_lea.vmem %s1227_s10, 1024 }
  0x67   : > { %712 = vmatpush1.bf16.msra.mxu0 %v711_v26  ;;  %v731_v63 = vpack.c.bf16 %v302_v62, %v300_v61  ;;  %v262_v2 = vld [vmem:[%s1277_s1 + $0x10] sm:$0xff]  ;;  %v265_v3 = vld [vmem:[%s1277_s1 + $0x28] sm:$0xff]  ;;  %v264_v4 = vld [vmem:[%s1277_s1 + $0x20] sm:$0xff]  ;;  %p871_p8 = scmp.ne.s32.totalorder %s1227_s10, %s870_s11  ;;  %p878_p7 = scmp.lt.s32.totalorder %s876_s16, %s870_s11 }
  0x68   : > { %714 = vmatprep.subr.bf16.mxu0 %v713_v28  ;;  %448 = vperm.xlu0 %810, %v442_v44   ;;  %v267_v5 = vld [vmem:[%s1277_s1 + $0x38] sm:$0xff]  ;;  %v266_v6 = vld [vmem:[%s1277_s1 + $0x30] sm:$0xff]  ;;  %v438_v40 = vld [vmem:[#allocation5] sm:$0xff] }
  0x69   : > { %453 = vperm.xlu1 %811, %v443_v48   ;;  %v439_v41 = vld [vmem:[#allocation5 + $0x8] sm:$0xff]  ;;  %v440_v42 = vld [vmem:[#allocation5 + $0x10] sm:$0xff]  ;;  %p872_p10 = pnand %p871_p8, %p1299_p9  ;;  %p879_p5 = por %p878_p7, %p877_p4 }
  0x6b   : > { %716 = vmatpush1.bf16.msra.mxu0 %v715_v35  ;;  %p873_p1 = pneg %p872_p10 }
  0x6c   : > { %718 = vmatprep.subr.bf16.mxu0 %v717_v37  ;;  %458 = vperm.xlu0 %810, %v444_v52  }
  0x6d   : > { %463 = vperm.xlu1 %811, %v445_v56   ;;  %p880_p11 = pnand %p879_p5, %p873_p1 }
  0x6f   : > { %720 = vmatpush1.bf16.msra.mxu0 %v719_v43  ;;  %v441_v43 = vld [vmem:[#allocation5 + $0x18] sm:$0xff] }
  0x70   : > { %722 = vmatprep.subr.bf16.mxu0 %v721_v45 }
  0x73   : > { %724 = vmatpush1.bf16.msra.mxu0 %v723_v51 }
  0x74   : > { %726 = vmatprep.subr.bf16.mxu0 %v725_v53 }
  0x77   : > { %728 = vmatpush1.bf16.msra.mxu0 %v727_v59 }
  0x78   : > { %730 = vmatprep.subr.bf16.mxu0 %v729_v60 }
  0x7b   : > { %732 = vmatpush1.bf16.msra.mxu0 %v731_v63 }
  0x7e   : > { %406 = vmatmul.mubr.f32.vlgmr.msra.gmra.mrb[0].mxu0 %v260_v0 }
  0x7f   : > { %683 = vmatprep.mubr.msk.f32.mxu0 %vm328_vm0, %v263_v1 }
  0x82   : > { %412 = vmatmul.mubr.f32.gmra.mrb[2].mxu0 %v262_v2 }
  0x83   : > { %684 = vmatprep.mubr.msk.f32.mxu0 %vm328_vm0, %v265_v3 }
  0x86   : > { %418 = vmatmul.mubr.f32.gmra.mrb[4].mxu0 %v264_v4 }
  0x87   : > { %685 = vmatprep.mubr.msk.f32.mxu0 %vm328_vm0, %v267_v5 }
  0x8a   : > { %424 = vmatmul.mubr.f32.gmra.mrb[6].mxu0 %v266_v6 }
  0xdf   : > { %v311_v8 = vpop.permute.xlu0 %310 }
  0xe0   : > { %v321_v17 = vpop.permute.xlu1 %320 }
  0xe3   : > { %v316_v12 = vpop.permute.xlu0 %315 }
  0xe4   : > { %v326_v28 = vpop.permute.xlu1 %325 }
  0xe7   : > { %v449_v44 = vpop.permute.xlu0 %448 }
  0xe8   : > { %v454_v49 = vpop.permute.xlu1 %453 }
  0xeb   : > { %v459_v54 = vpop.permute.xlu0 %458 }
  0xec   : > { %v464_v59 = vpop.permute.xlu1 %463 }
 0x151   : > { %v407_v9 = vpop.f32.mrb[0].mxu0 }
 0x152   : > { %v409_v10 = vpop.f32.mrb[1].mxu0  ;;  %v408_v11 = vadd.f32 %v407_v9, %v311_v8 }
 0x153   : > { %v410_v13 = vadd.f32 %v409_v10, %v311_v8 }
 0x154   : > { %v430_v19 = vmax.f32 %v408_v11, 0.0 }
 0x155   : > { %v413_v14 = vpop.f32.mrb[2].mxu0  ;;  %v431_v21 = vmax.f32 %v410_v13, 0.0 }
 0x156   : > { %v414_v15 = vadd.f32 %v413_v14, %v316_v12  ;;  %v415_v16 = vpop.f32.mrb[3].mxu0 }
 0x157   : > { %v416_v18 = vadd.f32 %v415_v16, %v316_v12 }
 0x158   : > { %v432_v20 = vmax.f32 %v414_v15, 0.0 }
 0x159   : > { %v433_v22 = vmax.f32 %v416_v18, 0.0  ;;  %v419_v23 = vpop.f32.mrb[4].mxu0 }
 0x15a   : > { %v421_v24 = vpop.f32.mrb[5].mxu0  ;;  %v735_v25 = vpack.c.bf16 %v432_v20, %v430_v19  ;;  %v420_v27 = vadd.f32 %v419_v23, %v321_v17 }
 0x15b   : > { %v733_v26 = vpack.c.bf16 %v433_v22, %v431_v21  ;;  %v422_v29 = vadd.f32 %v421_v24, %v321_v17 }
 0x15c   : > { %v434_v34 = vmax.f32 %v420_v27, 0.0 }
 0x15d   : > { %v425_v30 = vpop.f32.mrb[6].mxu0  ;;  %734 = vmatprep.subr.bf16.mxu1 %v733_v26  ;;  %v435_v36 = vmax.f32 %v422_v29, 0.0 }
 0x15e   : > { %v426_v31 = vadd.f32 %v425_v30, %v326_v28  ;;  %v427_v32 = vpop.f32.mrb[7].mxu0  ;;  %736 = vmatpush1.bf16.msra.mxu1 %v735_v25 }
 0x15f   : > { %v428_v33 = vadd.f32 %v427_v32, %v326_v28 }
 0x160   : > { %v436_v35 = vmax.f32 %v426_v31, 0.0 }
 0x161   : > { %v437_v37 = vmax.f32 %v428_v33, 0.0 }
 0x162   : > { %v739_v38 = vpack.c.bf16 %v436_v35, %v434_v34 }
 0x163   : > { %v737_v39 = vpack.c.bf16 %v437_v37, %v435_v36 }
 0x165   : > { %738 = vmatprep.subr.bf16.mxu1 %v737_v39 }
 0x166   : > { %740 = vmatpush1.bf16.msra.mxu1 %v739_v38 }
 0x169   : > { %686 = vmatmul.mubr.msk.f32.vlgmr.msra.gmra.mrb[0].mxu1 %vm466_vm1, %v438_v40 }
 0x16a   : > { %549 = vmatprep.mubr.f32.mxu1 %v950_v7 }
 0x16d   : > { %687 = vmatmul.mubr.msk.f32.gmra.mrb[2].mxu1 %vm466_vm1, %v439_v41 }
 0x16e   : > { %555 = vmatprep.mubr.f32.mxu1 %v950_v7 }
 0x171   : > { %688 = vmatmul.mubr.msk.f32.gmra.mrb[4].mxu1 %vm466_vm1, %v440_v42 }
 0x172   : > { %561 = vmatprep.mubr.f32.mxu1 %v950_v7 }
 0x175   : > { %689 = vmatmul.mubr.msk.f32.gmra.mrb[6].mxu1 %vm466_vm1, %v441_v43 }
 0x23c   : > { %v545_v45 = vpop.f32.mrb[0].mxu1 }
 0x23d   : > { %v546_v46 = vadd.f32 %v545_v45, %v449_v44  ;;  %v547_v47 = vpop.f32.mrb[1].mxu1 }
 0x23e   : > { %v548_v48 = vadd.f32 %v547_v47, %v449_v44 }
 0x23f   : > { %568 = vst [vmem:[%s257_s28] sm:$0xff] %v546_v46 }
 0x240   : > { %569 = vst [vmem:[%s257_s28 + $0x8] sm:$0xff] %v548_v48  ;;  %v551_v50 = vpop.f32.mrb[2].mxu1 }
 0x241   : > { %v552_v51 = vadd.f32 %v551_v50, %v454_v49  ;;  %v553_v52 = vpop.f32.mrb[3].mxu1 }
 0x242   : > { %v554_v53 = vadd.f32 %v553_v52, %v454_v49 }
 0x243   : > { %570 = vst [vmem:[%s257_s28 + $0x10] sm:$0xff] %v552_v51 }
 0x244   : > { %571 = vst [vmem:[%s257_s28 + $0x18] sm:$0xff] %v554_v53  ;;  %v557_v55 = vpop.f32.mrb[4].mxu1 }
 0x245   : > { %v558_v56 = vadd.f32 %v557_v55, %v459_v54  ;;  %v559_v57 = vpop.f32.mrb[5].mxu1 }
 0x246   : > { %v560_v58 = vadd.f32 %v559_v57, %v459_v54 }
 0x247   : > { %572 = vst [vmem:[%s257_s28 + $0x20] sm:$0xff] %v558_v56 }
 0x248   : > { %573 = vst [vmem:[%s257_s28 + $0x28] sm:$0xff] %v560_v58  ;;  %v563_v60 = vpop.f32.mrb[6].mxu1 }
 0x249   : > { %v564_v61 = vadd.f32 %v563_v60, %v464_v59  ;;  %v565_v62 = vpop.f32.mrb[7].mxu1 }
 0x24a   : > { %v566_v63 = vadd.f32 %v565_v62, %v464_v59 }
 0x24b   : > { %574 = vst [vmem:[%s257_s28 + $0x30] sm:$0xff] %v564_v61 }
 0x24c   : > { %575 = vst [vmem:[%s257_s28 + $0x38] sm:$0xff] %v566_v63 }
 0x24d   : > { %883 = shalt.err (!%p880_p11)
}
 0x24e   : > { %s884_s17 = scalar_lea.hbm %s1232_s26, 1024  ;;  %s888_s14 = scalar_lea.hbm %s1281_s5, 2048 }
 0x24f   : > { %p885_p13 = scmp.ne.s32.totalorder %s1232_s26, %s884_s17  ;;  %p889_p12 = scmp.lt.u32.totalorder %s1232_s26, %s1281_s5 }
 0x250   : > { %p890_p0 = scmp.lt.u32.totalorder %s888_s14, %s884_s17  ;;  %p892_p8 = scmp.lt.u32.totalorder %s884_s17, %s1232_s26 }
 0x251   : > { %p886_p2 = pnand %p885_p13, %p1299_p9 }
 0x252   : > { %p891_p3 = por %p890_p0, %p889_p12 }
 0x253   : > { %p887_p6 = pneg %p886_p2 }
 0x254   : > { %p893_p10 = por %p892_p8, %p891_p3 }
 0x256   : > { %p894_p1 = pnand %p893_p10, %p887_p6 }
 0x258   : > { %897 = shalt.err (!%p894_p1)
}
 0x259   : > { %s952_s15 = smov 256   ;;  %s953_s23 = smov 512  }
 0x25a   : > { %s954_s9 = smov 16  }
 0x25b   : > { %749 = dma.vmem_to_hbm [thread:$0]  (%p1299_p9), %s1227_s10, 1024, %s1232_s26, %s577_s22, %s952_s15, %s953_s23, %s954_s9  }
 0x25c PF: > { %s605_s11 = sand.u32 1, %s928_s18   ;;  %p1300_p4 = scmp.ne.s32.totalorder %s1289_s6, 0 }
 0x25d   : > { %p1301_p7 = scmp.ge.s32.totalorder %s940_s21, 2  ;;  %s606_s8 = scalar_lea.sflag [#allocation4], %s605_s11 }
 0x25f   : > { %p760_p5 = pnand %p1301_p7, %p1300_p4 }
 0x261   : > { %923 = dma.done.wait (!%p760_p5), %s606_s8, 1024  }
 0x262   : > { %925 = vsyncadd (!%p760_p5), %s606_s8, 4294966272  ;;  %p19_p11 = scmp.ge.s32.totalorder %s1010_s24, 4   ;;  %s1302_s18 = smov %s932_s19 }
 0x263   : > { %s1303_s19 = smov %s936_s20  ;;  %s1304_s20 = smov %s1022_s27 }
 0x264   : > { %s1305_s21 = smov %s1010_s24  ;;  %21 = sbr.rel (!%p19_p11) target bundleno = 6 (0x6), region = 89 }
 0x26b   :  { %611 = vsyncpa [#allocation3], 1 }
 0x26c   :  { %613 = vsyncpa [#allocation3 + $0x1], 1 }
 0x26d   :  { %614 = vsyncpa [#allocation6], 1 }
 0x26e   :  { %615 = vsyncpa [#allocation4], 1 }
 0x26f   :  { %617 = vsyncpa [#allocation4 + $0x1], 1 }

</bundles_post_ra>
